<compile_context>
chip_gen: v5e
topology: v5e:2x2
jax: 0.10.0
libtpu: 0.0.40
codegen_flags: <defaults>
</compile_context>

<pallas_src>
import functools

import jax
import jax.numpy as jnp
from jax import lax
from jax.experimental import pallas as pl
from jax.experimental.pallas import tpu as pltpu


def _logit_fwd_kernel(x_ref, w_ref, o_ref, acc_ref, *, n_features, tile_f, mask_f):
    """One (batch-tile, feature-tile) grid step.

    x_ref: (TB, TF) tile of x; w_ref: (1, TF) tile of the weight row;
    o_ref: (TB, 1) output tile; acc_ref: (TB, 1) f32 accumulator scratch.
    """
    k = pl.program_id(1)  # feature-tile (reduction) axis

    @pl.when(k == 0)
    def _():
        acc_ref[...] = jnp.zeros_like(acc_ref)

    x = x_ref[...].astype(jnp.float32)            # (TB, TF)
    w = w_ref[...].astype(jnp.float32)            # (1, TF)
    prod = x * w                                  # VPU multiply
    if mask_f:
        # Ragged last F tile: zero the contribution of the overhanging columns.
        col = k * tile_f + lax.broadcasted_iota(jnp.int32, (1, tile_f), 1)
        prod = jnp.where(col < n_features, prod, 0.0)
    # XLU lane reduce into the resident f32 accumulator.
    acc_ref[...] += jnp.sum(prod, axis=-1, keepdims=True)

    @pl.when(k == pl.num_programs(1) - 1)
    def _():
        z = acc_ref[...]
        # Exact sigmoid: exp + exact divide both hide under the HBM-bound regime.
        o_ref[...] = (1.0 / (1.0 + jnp.exp(-z))).astype(o_ref.dtype)


def _round_up(v, m):
    return ((v + m - 1) // m) * m


def _round_down(v, m):
    return (v // m) * m


def _choose_tiles(batch, n_features, itemsize, *, per_buffer_bytes=8 << 20):
    """Pick (tile_b, tile_f) so each x buffer is ~per_buffer_bytes (double-buffered
    slab ~2x that), tile_b is a multiple of 8, tile_f is F or a multiple of 128,
    and the batch grid has >= 2 tiles whenever the batch allows (v7x megacore)."""
    row_bytes = max(n_features, 1) * itemsize
    b8 = _round_up(max(batch, 1), 8)

    if 8 * row_bytes <= per_buffer_bytes:
        # Full F fits: tile only the batch axis.
        tile_f = n_features
        tile_b = _round_down(per_buffer_bytes // row_bytes, 8)
        tile_b = max(8, min(tile_b, b8))
        # Keep at least 2 batch tiles so the "parallel" axis spans both v7x TCs.
        if tile_b >= b8 and b8 > 8:
            tile_b = max(8, _round_up(-(-batch // 2), 8))
    else:
        # Very wide F: tile F too (inner reduction axis), minimal batch tile.
        tile_b = 8
        tile_f = max(128, _round_down(per_buffer_bytes // (8 * itemsize), 128))
        if tile_f >= n_features:
            tile_f = n_features
    return tile_b, tile_f


def logit_forward(x, weight, *, tile_b=None, tile_f=None, vmem_limit_bytes=32 << 20):
    """Forward pass of Logit.

    x: (B, F) float array; weight: (1, F) (torch nn.Linear.weight layout).
    Returns sigmoid(x @ weight.T) with shape (B, 1), float32.
    """
    B, F = x.shape
    assert weight.shape == (1, F)

    itemsize = jnp.dtype(x.dtype).itemsize
    auto_b, auto_f = _choose_tiles(B, F, itemsize)
    if tile_b is None:
        tile_b = auto_b
    if tile_f is None:
        tile_f = auto_f

    tile_b = max(8, (int(tile_b) // 8) * 8)
    tile_f = int(tile_f)
    if tile_f >= F:
        tile_f = F                      # single F block: full-dim block is legal
    else:
        tile_f = max(128, (tile_f // 128) * 128)  # (8,128) lane constraint
        if tile_f >= F:
            tile_f = F

    num_b = pl.cdiv(B, tile_b)          # last batch tile may overhang (no pad)
    num_f = pl.cdiv(F, tile_f)
    mask_f = (num_f > 1) and (F % tile_f != 0)

    kernel = functools.partial(
        _logit_fwd_kernel, n_features=F, tile_f=tile_f, mask_f=mask_f)

    out = pl.pallas_call(
        kernel,
        out_shape=jax.ShapeDtypeStruct((B, 1), jnp.float32),
        grid_spec=pltpu.PrefetchScalarGridSpec(
            num_scalar_prefetch=0,
            grid=(num_b, num_f),
            in_specs=[
                # x: tiled over (batch, features) -> double-buffered by Pallas.
                pl.BlockSpec((tile_b, tile_f), lambda i, k: (i, k)),
                # weight row: only the F-tile index varies (resident when num_f==1).
                pl.BlockSpec((1, tile_f), lambda i, k: (0, k)),
            ],
            # Same output block across the reduction axis -> resident accumulator
            # semantics; written only on the last F step via pl.when.
            out_specs=pl.BlockSpec((tile_b, 1), lambda i, k: (i, 0)),
            scratch_shapes=[pltpu.VMEM((tile_b, 1), jnp.float32)],
        ),
        compiler_params=pltpu.CompilerParams(
            # Batch tiles independent (megacore-shardable); F is a reduction.
            dimension_semantics=("parallel", "arbitrary"),
            # ~16 MiB double-buffered x slab + temps: explicit limit is safe on
            # v5e/v6e (128 MiB physical) and v7x (64 MiB per TC).
            vmem_limit_bytes=vmem_limit_bytes,
        ),
    )(x, weight)

    return out


if __name__ == "__main__":
    key = jax.random.PRNGKey(0)
    kx, kw, kx2, kx3, kw3 = jax.random.split(key, 5)

    # Small shapes consistent with the module: batch=8 samples, n_features=32.
    batch, n_features = 8, 32
    x = jax.random.normal(kx, (batch, n_features), dtype=jnp.float32)
    w = 0.05 * jax.random.normal(kw, (1, n_features), dtype=jnp.float32)  # torch layout (1, F)

    out = jax.block_until_ready(logit_forward(x, w))
    ref = jax.nn.sigmoid(x @ w.T)
    assert out.shape == (batch, 1)
    assert jnp.allclose(out, ref, atol=1e-5, rtol=1e-5)

    # Multi-tile batch grid with a ragged (overhanging, un-padded) tail.
    batch2 = 50
    x2 = jax.random.normal(kx2, (batch2, n_features), dtype=jnp.float32)
    out2 = jax.block_until_ready(logit_forward(x2, w, tile_b=16))
    ref2 = jax.nn.sigmoid(x2 @ w.T)
    assert out2.shape == (batch2, 1)
    assert jnp.allclose(out2, ref2, atol=1e-5, rtol=1e-5)

    # Feature-tiled (reduction grid axis) path, including the ragged-F mask.
    batch3, n_features3 = 24, 200
    x3 = jax.random.normal(kx3, (batch3, n_features3), dtype=jnp.float32)
    w3 = 0.05 * jax.random.normal(kw3, (1, n_features3), dtype=jnp.float32)
    out3 = jax.block_until_ready(logit_forward(x3, w3, tile_b=16, tile_f=128))
    ref3 = jax.nn.sigmoid(x3 @ w3.T)
    assert out3.shape == (batch3, 1)
    assert jnp.allclose(out3, ref3, atol=1e-5, rtol=1e-5)

    # TODO(synk): fit()/predict()/summary() (Adam, ReduceLROnPlateau, weighted BCE
    # training loop, pandas summary) are host-side optimization/reporting logic,
    # not part of the forward kernel.
    print("KERNEL_OK")
</pallas_src>

<mosaic_0001>
module attributes {stable_mosaic.version = 11 : i64} {
  func.func @_logit_fwd_kernel(%arg0: i32, %arg1: i32, %arg2: memref<8x32xf32, #tpu.memory_space<vmem>>, %arg3: memref<1x32xf32, #tpu.memory_space<vmem>>, %arg4: memref<8x1xf32, #tpu.memory_space<vmem>>, %arg5: memref<8x1xf32, #tpu.memory_space<vmem>>) attributes {dimension_semantics = [#tpu.dimension_semantics<parallel>, #tpu.dimension_semantics<arbitrary>], iteration_bounds = array<i64: 1, 1>, scalar_prefetch = 0 : i64, scratch_operands = 1 : i64, tpu.core_type = #tpu.core_type<tc>, window_params = [{transform_indices = @transform_0, window_bounds = array<i64: 8, 32>}, {transform_indices = @transform_1, window_bounds = array<i64: 1, 32>}, {transform_indices = @transform_2, window_bounds = array<i64: 8, 1>}]} {
    %c0_i32 = arith.constant 0 : i32
    %0 = arith.cmpi eq, %arg1, %c0_i32 : i32
    %1 = arith.extui %0 : i1 to i32
    %c0_i32_0 = arith.constant 0 : i32
    %2 = arith.cmpi ne, %1, %c0_i32_0 : i32
    scf.if %2 {
      %cst_10 = arith.constant 0.000000e+00 : f32
      %15 = vector.broadcast %cst_10 : f32 to vector<8x1xf32>
      %c0_11 = arith.constant 0 : index
      %c0_12 = arith.constant 0 : index
      %16 = vector.load %arg5[%c0_11, %c0_12] : memref<8x1xf32, #tpu.memory_space<vmem>>, vector<8x1xf32>
      tpu.vector_store %arg5[%c0_11, %c0_12], %15 {strides = array<i32>} : memref<8x1xf32, #tpu.memory_space<vmem>>, vector<8x1xf32>,
    } else {
    }
    %c0 = arith.constant 0 : index
    %c0_1 = arith.constant 0 : index
    %3 = vector.load %arg2[%c0, %c0_1] : memref<8x32xf32, #tpu.memory_space<vmem>>, vector<8x32xf32>
    %c0_2 = arith.constant 0 : index
    %c0_3 = arith.constant 0 : index
    %4 = vector.load %arg3[%c0_2, %c0_3] : memref<1x32xf32, #tpu.memory_space<vmem>>, vector<1x32xf32>
    %5 = vector.broadcast %4 : vector<1x32xf32> to vector<8x32xf32>
    %6 = arith.mulf %3, %5 : vector<8x32xf32>
    %c0_4 = arith.constant 0 : index
    %c0_5 = arith.constant 0 : index
    %7 = vector.load %arg5[%c0_4, %c0_5] : memref<8x1xf32, #tpu.memory_space<vmem>>, vector<8x1xf32>
    %cst = arith.constant dense<0.000000e+00> : vector<8xf32>
    %8 = vector.multi_reduction <add>, %6, %cst [1] : vector<8x32xf32> to vector<8xf32>
    %9 = vector.shape_cast %8 : vector<8xf32> to vector<8x1xf32>
    %10 = arith.addf %7, %9 : vector<8x1xf32>
    %c0_6 = arith.constant 0 : index
    %c0_7 = arith.constant 0 : index
    %11 = vector.load %arg5[%c0_6, %c0_7] : memref<8x1xf32, #tpu.memory_space<vmem>>, vector<8x1xf32>
    tpu.vector_store %arg5[%c0_6, %c0_7], %10 {strides = array<i32>} : memref<8x1xf32, #tpu.memory_space<vmem>>, vector<8x1xf32>,
    %c0_i32_8 = arith.constant 0 : i32
    %12 = arith.cmpi eq, %arg1, %c0_i32_8 : i32
    %13 = arith.extui %12 : i1 to i32
    %c0_i32_9 = arith.constant 0 : i32
    %14 = arith.cmpi ne, %13, %c0_i32_9 : i32
    scf.if %14 {
      %c0_10 = arith.constant 0 : index
      %c0_11 = arith.constant 0 : index
      %15 = vector.load %arg5[%c0_10, %c0_11] : memref<8x1xf32, #tpu.memory_space<vmem>>, vector<8x1xf32>
      %cst_12 = arith.constant 0.000000e+00 : f32
      %16 = vector.broadcast %cst_12 : f32 to vector<8x1xf32>
      %17 = arith.subf %16, %15 : vector<8x1xf32>
      %18 = math.exp %17 : vector<8x1xf32>
      %cst_13 = arith.constant 1.000000e+00 : f32
      %19 = vector.broadcast %cst_13 : f32 to vector<8x1xf32>
      %20 = arith.addf %19, %18 : vector<8x1xf32>
      %cst_14 = arith.constant 1.000000e+00 : f32
      %21 = vector.broadcast %cst_14 : f32 to vector<8x1xf32>
      %22 = arith.divf %21, %20 : vector<8x1xf32>
      %c0_15 = arith.constant 0 : index
      %c0_16 = arith.constant 0 : index
      %23 = vector.load %arg4[%c0_15, %c0_16] : memref<8x1xf32, #tpu.memory_space<vmem>>, vector<8x1xf32>
      tpu.vector_store %arg4[%c0_15, %c0_16], %22 {strides = array<i32>} : memref<8x1xf32, #tpu.memory_space<vmem>>, vector<8x1xf32>,
    } else {
    }
    return
  }
  func.func @transform_0(%arg0: i32, %arg1: i32) -> (i32, i32) {
    %c0_i32 = arith.constant 0 : i32
    return %arg0, %arg1 : i32, i32
  }
  func.func @transform_1(%arg0: i32, %arg1: i32) -> (i32, i32) {
    %c0_i32 = arith.constant 0 : i32
    %c0_i32_0 = arith.constant 0 : i32
    return %c0_i32, %arg1 : i32, i32
  }
  func.func @transform_2(%arg0: i32, %arg1: i32) -> (i32, i32) {
    %c0_i32 = arith.constant 0 : i32
    %c0_i32_0 = arith.constant 0 : i32
    return %arg0, %c0_i32 : i32, i32
  }
}

</mosaic_0001>

<bundles_post_ra>
// kernel: tpu_custom_call.1
= control target key start
LH: loop header
LB: loop body
LE: loop exit
PB: predicated region body
PF: predicated region fallthrough
CT: control target
= control target key end

     0   :  { %7 = vsyncpa [#allocation4], 0  ;;  %s179_s0 = inlined_call_operand.hbm [shape: f32[8,32], index: 0, kind: input, shape index: {}]   ;;  %s180_s1 = inlined_call_operand.hbm [shape: f32[1,32], index: 1, kind: input, shape index: {}]   ;;  %s181_s2 = inlined_call_operand.vmem [shape: f32[8,1], index: 2, kind: output, shape index: {}]  }
   0x1   :  { %s14_s11 = sshll.u32 %s179_s0, 4  ;;  %s15_s11 = int_to_ptr.hbm [resolvable:$true] %s14_s11 }
   0x2   :  { %8 = vsyncpa [#allocation6], 0  ;;  %s149_s12 = smov [#allocation3]   ;;  %s25_s16 = sshll.u32 %s180_s1, 4  ;;  %s26_s16 = int_to_ptr.hbm [resolvable:$true] %s25_s16 }
   0x3   :  { %s16_s13 = sshll.u32 %s149_s12, 4  ;;  %s150_s17 = smov [#allocation5]   ;;  %s17_s13 = int_to_ptr.vmem [resolvable:$true] %s16_s13 }
   0x4   :  { %19 = dma.hbm_to_vmem [thread:$0]  %s15_s11, 128, %s17_s13, [#allocation4]  }
   0x5   :  { %s27_s18 = sshll.u32 %s150_s17, 4  ;;  %s28_s18 = int_to_ptr.vmem [resolvable:$true] %s27_s18 }
   0x6   :  { %30 = dma.hbm_to_vmem [thread:$0]  %s26_s16, 16, %s28_s18, [#allocation6]  }
   0x7   :  { %145 = dma.done.wait [#allocation4], 128  }
   0x8   :  { %146 = vsyncadd [#allocation4], 4294967168 }
   0x9   :  { %147 = dma.done.wait [#allocation6], 16  }
   0xa   :  { %148 = vsyncadd [#allocation6], 4294967280  ;;  %vm43_vm0 = vcmask 7168   ;;  %v151_v0 = vmov 0.0   ;;  %v45_v1 = vld [vmem:[#allocation3] sm:$0xff]  ;;  %vm52_vm1 = vcmask 261120  }
   0xb   :  { %44 = vst.msk [vmem:[#allocation2] sm:$0xff] %vm43_vm0, %v151_v0  ;;  %v92_v2 = vld [vmem:[#allocation5] ss:$0 sm:$0xff] }
   0xc   :  { %v50_v3 = vmul.f32 %v92_v2, %v45_v1 }
   0xe   :  { %v53_v4 = vsel %vm52_vm1, %v50_v3, 0.0 }
   0xf   :  { %54 = vadd.xlane.f32.xlu0 %v53_v4 }
  0x12   :  { %v51_v5 = vld [vmem:[#allocation2] sm:$0xff] }
  0x82   :  { %v55_v6 = vpop.xlane.xlu0 %54 }
  0x83   :  { %v56_v7 = vadd.f32 %v55_v6, %v51_v5 }
  0x85   :  { %58 = vst.msk [vmem:[#allocation2] sm:$0xff] %vm43_vm0, %v56_v7 }
  0x8c   :  { %v62_v8 = vld [vmem:[#allocation2] sm:$0xff] }
  0x8d   :  { %v63_v9 = vsub.f32 0.0, %v62_v8 }
  0x8f   :  { %v64_v10 = vmul.f32 1.442695, %v63_v9 }
  0x91   :  { %93 = vpow2.f32 %v64_v10 }
  0x97   :  { %v94_v11 = vpop.eup %93 }
  0x98   :  { %v66_v12 = vadd.f32 1.0, %v94_v11 }
  0x9a   :  { %95 = vrcp.f32 %v66_v12  ;;  %v78_v16 = vand.u32 2147483648, %v66_v12  ;;  %v76_v18 = vand.u32 2147483647, %v66_v12  ;;  %vm72_vm3 = vweird.f32 %v66_v12 }
  0x9c   :  { %v79_v20 = vor.u32 1.1754944e-38, %v78_v16  ;;  %vm77_vm5 = vcmp.eq.f32.partialorder %v76_v18, 8.507059e+37 }
  0xa0   :  { %v96_v13 = vpop.eup %95 }
  0xa1   :  { %v68_v14 = vmul.f32 %v96_v13, %v66_v12  ;;  %vm73_vm2 = vweird.f32 %v96_v13 }
  0xa2   :  { %vm74_vm4 = vmor %vm72_vm3, %vm73_vm2 }
  0xa3   :  { %v69_v15 = vsub.f32 1.0, %v68_v14 }
  0xa5   :  { %v70_v17 = vmul.f32 %v96_v13, %v69_v15 }
  0xa7   :  { %v71_v19 = vadd.f32 %v96_v13, %v70_v17 }
  0xa9   :  { %v75_v21 = vsel %vm74_vm4, %v96_v13, %v71_v19 }
  0xaa   :  { %v80_v22 = vsel %vm77_vm5, %v79_v20, %v75_v21 }
  0xab   :  { %82 = vst.msk [vmem:[%s181_s2] sm:$0xff] %vm43_vm0, %v80_v22 }
  0xac   :  { %87 = vsyncpa [#allocation4], 1 }
  0xad   :  { %88 = vsyncpa [#allocation6], 1 }

</bundles_post_ra>
